<compile_context>
chip_gen: v7x
topology: tpu7x:2x2x1
jax: 0.10.0
libtpu: 0.0.40
codegen_flags: <defaults>
</compile_context>

<pallas_src>
import math

import jax
import jax.numpy as jnp
import numpy as np
from jax.experimental import pallas as pl
from jax.experimental.pallas import tpu as pltpu

NEG_SLOPE = 0.01  # F.leaky_relu default


def _leaky_relu(h):
    return jnp.where(h > 0, h, NEG_SLOPE * h)


def _round_up(v, m):
    return -(-v // m) * m


def _next_pow2(v):
    return 1 << (int(v) - 1).bit_length()


def _default_node_block():
    # v5e MXU is 128x128 -> TB=4 keeps the block-diagonal layer-1 tile single-pass;
    # v6e/v7x MXU is 256-wide -> TB=8 fills the array.
    try:
        kind = jax.devices()[0].device_kind.lower()
    except Exception:
        return 8
    if "v5 lite" in kind or "v5e" in kind or "v5lite" in kind:
        return 4
    return 8


def _make_kernel(G, TB, Hp, compute_dtype):
    THBp = TB * Hp  # layer-1 output lane width per node block (interleaved lanes i*TB + t)

    def kernel(x_ref, w0_ref, w1_ref, w2_ref, o_ref):
        # x_ref : [TN, d]            sample tile
        # w0_ref: [G, d, TB*H]       masked+transposed layer-0 weights (block lane order)
        # w1_ref: [G, TB*H, TB*Hp]   block-diagonal layer-1 weights, interleaved output lanes
        # w2_ref: [G, 1, TB*Hp]      packed layer-2 row vectors, interleaved lanes
        # o_ref : [TN, G*TB]         lane-dense output block for this (sample tile, node group)
        x = x_ref[...]
        for g in range(G):  # static unroll; G <= 16
            # layer 0: one MXU matmul (mask already folded into the weights)
            h = jnp.dot(x, w0_ref[g], preferred_element_type=jnp.float32)
            h = _leaky_relu(h)
            # layer 1: block-diagonal MXU matmul
            h = jnp.dot(h.astype(compute_dtype), w1_ref[g],
                        preferred_element_type=jnp.float32)
            h = _leaky_relu(h)
            # layer 2 off the MXU: VPU multiply by w2 row, then a lane fold-tree.
            # Lanes are ordered i*TB + t, so each fold adds two contiguous halves and the
            # per-node sums land on lanes 0..TB-1 after log2(Hp) steps.
            r = h * w2_ref[g].astype(jnp.float32)           # [TN, TB*Hp]
            w = THBp
            while w > TB:
                w //= 2
                r = r[:, :w] + r[:, w:]
            o_ref[:, g * TB:(g + 1) * TB] = r.astype(o_ref.dtype)

    return kernel


def grandag_forward(x, w0, w1, w2, *, node_block=None, sample_block=None,
                    compute_dtype=jnp.bfloat16):
    """GraNDAG forward.  x: [n, d]; w0: [d, H, d]; w1: [d, H, H]; w2: [d, 1, H] -> [n, d]."""
    n, d = x.shape
    H = w0.shape[1]
    assert w0.shape == (d, H, d)
    assert w1.shape == (d, H, H)
    # TODO(synk): num_params > 1 and num_layers != 3 not supported by this kernel.
    assert w2.shape == (d, 1, H), "kernel assumes num_params == 1"

    out_dtype = x.dtype
    out_size = jnp.dtype(out_dtype).itemsize
    cdtype = jnp.dtype(compute_dtype)
    cd_size = cdtype.itemsize
    f32 = jnp.float32

    TB = int(node_block) if node_block is not None else _default_node_block()
    Hp = _next_pow2(H)              # hidden padded to a power of two for the fold-tree
    THB = TB * H                    # layer-1 input lane width per node block
    THBp = TB * Hp                  # layer-1 output lane width per node block

    # ---- node grouping: GB nodes per grid step; lane-dense (GB = 128) for large d ----------
    d_r = _round_up(d, TB)
    if d_r <= 128:
        GB, nG = d_r, 1             # output block = full node dim (legal for any width)
    else:
        GB = 128                    # multiple of 128 lanes -> unmasked wide stores
        nG = -(-d_r // GB)
    G = GB // TB
    d_pad = nG * GB

    # ---- sample tiling ----------------------------------------------------------------------
    align = 16 if cd_size < 4 else 8
    tn_cap = 1024
    if sample_block is None:
        TN = min(_round_up(n, align), tn_cap)
        if nG == 1 and n > align:
            # guarantee >= 2 grid steps so both v7x TensorCores get work
            TN = min(TN, _round_up(-(-n // 2), align))
    else:
        TN = _round_up(int(sample_block), align)

    def vmem_estimate(tn):
        blocks = ((tn * d + G * d * THB + G * THB * THBp + G * 8 * THBp) * cd_size
                  + tn * GB * out_size)
        interm = 6 * tn * max(THB, THBp) * 4      # slack for spilled h0/h1/fold values
        return 2 * blocks + interm + (4 << 20)    # double-buffered blocks + margin

    while vmem_estimate(TN) > (44 << 20) and TN > 2 * align:
        TN = _round_up(TN // 2, align)

    n_pad = _round_up(n, TN)
    ns = n_pad // TN

    # ---- per-call weight packing --------------------------------------------------------------
    self_mask = 1.0 - jnp.eye(d, dtype=f32)                      # self_mask[t, j] = (t != j)

    # layer 0: fold the mask in, transpose to [in, out], block nodes:
    #   w0cat[bi, s, j, t*H + i] = W0[node, i, j] * (j != node),  node = bi*GB + s*TB + t
    w0m = w0.astype(f32) * self_mask[:, None, :]                 # [d, H, d]
    w0m = jnp.pad(w0m, ((0, d_pad - d), (0, 0), (0, 0)))
    w0cat = (w0m.reshape(nG, G, TB, H, d)
                 .transpose(0, 1, 4, 2, 3)                       # bi, s, j, t, i
                 .reshape(nG, G, d, THB)).astype(cdtype)

    eye_tb = jnp.eye(TB, dtype=f32)
    # layer 1: block-diagonal with interleaved output lanes:
    #   w1mix[bi, s, t*H + j, i*TB + t'] = W1[node, i, j] * (t == t')
    # TODO(synk): for few sample tiles this TBx-inflated tile dominates HBM traffic; build the
    # block-diagonal in-kernel (once per node group) from compact [TB,H,H] blocks instead.
    w1p = jnp.pad(w1.astype(f32), ((0, d_pad - d), (0, Hp - H), (0, 0)))   # [d_pad, Hp, H]
    w1r = w1p.reshape(nG, G, TB, Hp, H)
    w1mix = jnp.einsum('gstij,tu->gstjiu', w1r, eye_tb)
    w1mix = w1mix.reshape(nG, G, THB, THBp).astype(cdtype)

    # layer 2 (num_params == 1): packed row vector, interleaved lanes:
    #   w2row[bi, s, 0, i*TB + t] = W2[node, 0, i]
    w2p = jnp.pad(w2[:, 0, :].astype(f32), ((0, d_pad - d), (0, Hp - H)))  # [d_pad, Hp]
    w2row = (w2p.reshape(nG, G, TB, Hp)
                 .transpose(0, 1, 3, 2)                          # bi, s, i, t
                 .reshape(nG, G, 1, THBp)).astype(cdtype)

    x_pad = jnp.pad(x.astype(cdtype), ((0, n_pad - n), (0, 0)))

    flops = 2 * n_pad * d_pad * (d * H + THB * Hp + 2 * Hp)
    bytes_accessed = (nG * n_pad * d * cd_size
                      + (w0cat.size + w1mix.size + w2row.size) * cd_size
                      + n_pad * d_pad * out_size)

    out = pl.pallas_call(
        _make_kernel(G, TB, Hp, cdtype),
        out_shape=jax.ShapeDtypeStruct((n_pad, d_pad), out_dtype),
        grid_spec=pltpu.PrefetchScalarGridSpec(
            num_scalar_prefetch=0,
            grid=(nG, ns),  # node groups outer (weights stay resident), samples inner
            in_specs=[
                pl.BlockSpec((TN, d), lambda bi, si: (si, 0)),                      # x tile
                pl.BlockSpec((None, G, d, THB), lambda bi, si: (bi, 0, 0, 0)),      # w0cat
                pl.BlockSpec((None, G, THB, THBp), lambda bi, si: (bi, 0, 0, 0)),   # w1mix
                pl.BlockSpec((None, G, 1, THBp), lambda bi, si: (bi, 0, 0, 0)),     # w2row
            ],
            out_specs=pl.BlockSpec((TN, GB), lambda bi, si: (si, bi)),
        ),
        compiler_params=pltpu.CompilerParams(
            dimension_semantics=("parallel", "parallel"),
            vmem_limit_bytes=int(min(max(vmem_estimate(TN), 32 << 20), 48 << 20)),
        ),
        cost_estimate=pl.CostEstimate(flops=int(flops), transcendentals=0,
                                      bytes_accessed=int(bytes_accessed)),
    )(x_pad, w0cat, w1mix, w2row)

    # direct lane-dense output: no transpose pass, just slice off padding
    return out[:n, :d]


# ------------------------------ init & reference --------------------------------

def _xavier_uniform(key, shape, gain):
    """nn.init.xavier_uniform_ on a 2-D [out, in] slice."""
    fan_out, fan_in = shape
    bound = gain * math.sqrt(6.0 / (fan_in + fan_out))
    return jax.random.uniform(key, shape, jnp.float32, -bound, bound)


def init_params(key, d, hidden_dim, num_layers, num_params=1):
    """Deterministic re-implementation of GraNDAG.reset_parameters()."""
    gain = math.sqrt(2.0 / (1.0 + NEG_SLOPE ** 2))  # calculate_gain('leaky_relu')
    weights = []
    for i in range(num_layers):
        in_dim = out_dim = hidden_dim
        if i == 0:
            in_dim = d
        if i == num_layers - 1:
            out_dim = num_params
        per_node = []
        for _node in range(d):
            key, sub = jax.random.split(key)
            per_node.append(_xavier_uniform(sub, (out_dim, in_dim), gain))
        weights.append(jnp.stack(per_node, axis=0))  # [d, out_dim, in_dim]
    return weights


def _reference_forward_np(x, weights):
    """Pure numpy reference matching the torch einsum path."""
    x = np.asarray(x, np.float32)
    d = x.shape[1]
    mask = np.ones((d, d), np.float32) - np.eye(d, dtype=np.float32)
    h = x
    num_layers = len(weights)
    for k, w in enumerate(weights):
        w = np.asarray(w, np.float32)
        if k == 0:
            h = np.einsum('tij,jt,bj->bti', w, mask, h)
        else:
            h = np.einsum('tij,btj->bti', w, h)
        if k != num_layers - 1:
            h = np.where(h > 0, h, NEG_SLOPE * h)
    return h[:, :, 0]  # squeeze(dim=2) with num_params == 1


def _rel_err(out, ref):
    ref = np.asarray(ref, np.float32)
    return float(np.max(np.abs(np.asarray(out, np.float32) - ref))
                 / max(float(np.max(np.abs(ref))), 1e-6))


if __name__ == "__main__":
    n, d, H, num_layers, num_params = 16, 8, 32, 3, 1

    key = jax.random.PRNGKey(0)
    key, kx = jax.random.split(key)
    x = jax.random.normal(kx, (n, d), jnp.float32)
    w0, w1, w2 = init_params(key, d, H, num_layers, num_params)
    ref = _reference_forward_np(x, [w0, w1, w2])

    # default path: bf16 compute, f32 accumulation
    out = jax.block_until_ready(grandag_forward(x, w0, w1, w2))
    assert _rel_err(out, ref) < 2e-2, _rel_err(out, ref)

    # f32 compute path (tight tolerance)
    out_f32 = jax.block_until_ready(
        grandag_forward(x, w0, w1, w2, compute_dtype=jnp.float32))
    np.testing.assert_allclose(np.asarray(out_f32), ref, rtol=2e-3, atol=2e-3)

    # non-aligned shapes: d=20 (3 node blocks inside one group), n=50 (4 sample tiles of 16)
    n2, d2 = 50, 20
    key, kx2, kw = jax.random.split(key, 3)
    x2 = jax.random.normal(kx2, (n2, d2), jnp.float32)
    w0b, w1b, w2b = init_params(kw, d2, H, num_layers, num_params)
    ref2 = _reference_forward_np(x2, [w0b, w1b, w2b])
    out2 = jax.block_until_ready(
        grandag_forward(x2, w0b, w1b, w2b, node_block=8, sample_block=16,
                        compute_dtype=jnp.float32))
    np.testing.assert_allclose(np.asarray(out2), ref2, rtol=2e-3, atol=2e-3)

    # larger / lane-dense path: d=160 -> 2 node groups with 128-lane output blocks
    n3, d3 = 256, 160
    key, kx3, kw3 = jax.random.split(key, 3)
    x3 = jax.random.normal(kx3, (n3, d3), jnp.float32)
    w0c, w1c, w2c = init_params(kw3, d3, H, num_layers, num_params)
    ref3 = _reference_forward_np(x3, [w0c, w1c, w2c])
    out3 = jax.block_until_ready(grandag_forward(x3, w0c, w1c, w2c))
    assert _rel_err(out3, ref3) < 2e-2, _rel_err(out3, ref3)

    print("KERNEL_OK")
</pallas_src>

<mosaic_0001>
module attributes {stable_mosaic.version = 11 : i64} {
  func.func @kernel(%arg0: i32, %arg1: i32, %arg2: memref<16x8xbf16, #tpu.memory_space<vmem>>, %arg3: memref<1x1x8x256xbf16, #tpu.memory_space<vmem>>, %arg4: memref<1x1x256x256xbf16, #tpu.memory_space<vmem>>, %arg5: memref<1x1x1x256xbf16, #tpu.memory_space<vmem>>, %arg6: memref<16x8xf32, #tpu.memory_space<vmem>>) attributes {dimension_semantics = [#tpu.dimension_semantics<parallel>, #tpu.dimension_semantics<parallel>], iteration_bounds = array<i64: 1, 1>, scalar_prefetch = 0 : i64, scratch_operands = 0 : i64, tpu.core_type = #tpu.core_type<tc>, window_params = [{transform_indices = @transform_0, window_bounds = array<i64: 16, 8>}, {transform_indices = @transform_1, window_bounds = array<i64: 1, 1, 8, 256>}, {transform_indices = @transform_2, window_bounds = array<i64: 1, 1, 256, 256>}, {transform_indices = @transform_3, window_bounds = array<i64: 1, 1, 1, 256>}, {transform_indices = @transform_4, window_bounds = array<i64: 16, 8>}]} {
    %c0 = arith.constant 0 : index
    %c0_0 = arith.constant 0 : index
    %0 = vector.load %arg2[%c0, %c0_0] : memref<16x8xbf16, #tpu.memory_space<vmem>>, vector<16x8xbf16>
    %c0_1 = arith.constant 0 : index
    %c0_2 = arith.constant 0 : index
    %c0_3 = arith.constant 0 : index
    %c0_4 = arith.constant 0 : index
    %1 = vector.load %arg3[%c0_1, %c0_2, %c0_3, %c0_4] : memref<1x1x8x256xbf16, #tpu.memory_space<vmem>>, vector<1x1x8x256xbf16>
    %2 = vector.shape_cast %1 : vector<1x1x8x256xbf16> to vector<8x256xbf16>
    %cst = arith.constant dense<0.000000e+00> : vector<16x256xf32>
    %3 = tpu.matmul %0, %2, %cst {dimension_numbers = #tpu.dot_dimension_numbers<[1], [0], [0], [1], [0, 0, 1, 1], [], []>} : vector<16x8xbf16>, vector<8x256xbf16>, vector<16x256xf32> -> vector<16x256xf32>
    %cst_5 = arith.constant 0.000000e+00 : f32
    %4 = vector.broadcast %cst_5 : f32 to vector<16x256xf32>
    %5 = arith.cmpf ogt, %3, %4 : vector<16x256xf32>
    %cst_6 = arith.constant 0.00999999977 : f32
    %6 = vector.broadcast %cst_6 : f32 to vector<16x256xf32>
    %7 = arith.mulf %6, %3 : vector<16x256xf32>
    %8 = arith.select %5, %3, %7 : vector<16x256xi1>, vector<16x256xf32>
    %9 = arith.truncf %8 : vector<16x256xf32> to vector<16x256xbf16>
    %c0_7 = arith.constant 0 : index
    %c0_8 = arith.constant 0 : index
    %c0_9 = arith.constant 0 : index
    %c0_10 = arith.constant 0 : index
    %10 = vector.load %arg4[%c0_7, %c0_8, %c0_9, %c0_10] : memref<1x1x256x256xbf16, #tpu.memory_space<vmem>>, vector<1x1x256x256xbf16>
    %11 = vector.shape_cast %10 : vector<1x1x256x256xbf16> to vector<256x256xbf16>
    %cst_11 = arith.constant dense<0.000000e+00> : vector<16x256xf32>
    %12 = tpu.matmul %9, %11, %cst_11 {dimension_numbers = #tpu.dot_dimension_numbers<[1], [0], [0], [1], [0, 0, 1, 1], [], []>} : vector<16x256xbf16>, vector<256x256xbf16>, vector<16x256xf32> -> vector<16x256xf32>
    %cst_12 = arith.constant 0.000000e+00 : f32
    %13 = vector.broadcast %cst_12 : f32 to vector<16x256xf32>
    %14 = arith.cmpf ogt, %12, %13 : vector<16x256xf32>
    %cst_13 = arith.constant 0.00999999977 : f32
    %15 = vector.broadcast %cst_13 : f32 to vector<16x256xf32>
    %16 = arith.mulf %15, %12 : vector<16x256xf32>
    %17 = arith.select %14, %12, %16 : vector<16x256xi1>, vector<16x256xf32>
    %c0_14 = arith.constant 0 : index
    %c0_15 = arith.constant 0 : index
    %c0_16 = arith.constant 0 : index
    %c0_17 = arith.constant 0 : index
    %18 = vector.load %arg5[%c0_14, %c0_15, %c0_16, %c0_17] : memref<1x1x1x256xbf16, #tpu.memory_space<vmem>>, vector<1x1x1x256xbf16>
    %19 = vector.shape_cast %18 : vector<1x1x1x256xbf16> to vector<1x256xbf16>
    %20 = arith.extf %19 : vector<1x256xbf16> to vector<1x256xf32>
    %21 = vector.broadcast %20 : vector<1x256xf32> to vector<16x256xf32>
    %22 = arith.mulf %17, %21 : vector<16x256xf32>
    %23 = vector.extract_strided_slice %22 {offsets = [0, 0], sizes = [16, 128], strides = [1, 1]} : vector<16x256xf32> to vector<16x128xf32>
    %24 = vector.extract_strided_slice %22 {offsets = [0, 128], sizes = [16, 128], strides = [1, 1]} : vector<16x256xf32> to vector<16x128xf32>
    %25 = arith.addf %23, %24 : vector<16x128xf32>
    %26 = vector.extract_strided_slice %25 {offsets = [0, 0], sizes = [16, 64], strides = [1, 1]} : vector<16x128xf32> to vector<16x64xf32>
    %27 = vector.extract_strided_slice %25 {offsets = [0, 64], sizes = [16, 64], strides = [1, 1]} : vector<16x128xf32> to vector<16x64xf32>
    %28 = arith.addf %26, %27 : vector<16x64xf32>
    %29 = vector.extract_strided_slice %28 {offsets = [0, 0], sizes = [16, 32], strides = [1, 1]} : vector<16x64xf32> to vector<16x32xf32>
    %30 = vector.extract_strided_slice %28 {offsets = [0, 32], sizes = [16, 32], strides = [1, 1]} : vector<16x64xf32> to vector<16x32xf32>
    %31 = arith.addf %29, %30 : vector<16x32xf32>
    %32 = vector.extract_strided_slice %31 {offsets = [0, 0], sizes = [16, 16], strides = [1, 1]} : vector<16x32xf32> to vector<16x16xf32>
    %33 = vector.extract_strided_slice %31 {offsets = [0, 16], sizes = [16, 16], strides = [1, 1]} : vector<16x32xf32> to vector<16x16xf32>
    %34 = arith.addf %32, %33 : vector<16x16xf32>
    %35 = vector.extract_strided_slice %34 {offsets = [0, 0], sizes = [16, 8], strides = [1, 1]} : vector<16x16xf32> to vector<16x8xf32>
    %36 = vector.extract_strided_slice %34 {offsets = [0, 8], sizes = [16, 8], strides = [1, 1]} : vector<16x16xf32> to vector<16x8xf32>
    %37 = arith.addf %35, %36 : vector<16x8xf32>
    %c0_18 = arith.constant 0 : index
    %c0_19 = arith.constant 0 : index
    %38 = vector.load %arg6[%c0_18, %c0_19] : memref<16x8xf32, #tpu.memory_space<vmem>>, vector<16x8xf32>
    tpu.vector_store %arg6[%c0_18, %c0_19], %37 {strides = array<i32>} : memref<16x8xf32, #tpu.memory_space<vmem>>, vector<16x8xf32>,
    return
  }
  func.func @transform_0(%arg0: i32, %arg1: i32) -> (i32, i32) {
    %c0_i32 = arith.constant 0 : i32
    %c0_i32_0 = arith.constant 0 : i32
    return %arg1, %c0_i32 : i32, i32
  }
  func.func @transform_1(%arg0: i32, %arg1: i32) -> (i32, i32, i32, i32) {
    %c0_i32 = arith.constant 0 : i32
    %c0_i32_0 = arith.constant 0 : i32
    %c0_i32_1 = arith.constant 0 : i32
    %c0_i32_2 = arith.constant 0 : i32
    return %arg0, %c0_i32, %c0_i32_0, %c0_i32_1 : i32, i32, i32, i32
  }
  func.func @transform_2(%arg0: i32, %arg1: i32) -> (i32, i32, i32, i32) {
    %c0_i32 = arith.constant 0 : i32
    %c0_i32_0 = arith.constant 0 : i32
    %c0_i32_1 = arith.constant 0 : i32
    %c0_i32_2 = arith.constant 0 : i32
    return %arg0, %c0_i32, %c0_i32_0, %c0_i32_1 : i32, i32, i32, i32
  }
  func.func @transform_3(%arg0: i32, %arg1: i32) -> (i32, i32, i32, i32) {
    %c0_i32 = arith.constant 0 : i32
    %c0_i32_0 = arith.constant 0 : i32
    %c0_i32_1 = arith.constant 0 : i32
    %c0_i32_2 = arith.constant 0 : i32
    return %arg0, %c0_i32, %c0_i32_0, %c0_i32_1 : i32, i32, i32, i32
  }
  func.func @transform_4(%arg0: i32, %arg1: i32) -> (i32, i32) {
    %c0_i32 = arith.constant 0 : i32
    return %arg1, %arg0 : i32, i32
  }
}

</mosaic_0001>

<bundles_post_ra>
// kernel: tpu_custom_call.1
= control target key start
LH: loop header
LB: loop body
LE: loop exit
PB: predicated region body
PF: predicated region fallthrough
CT: control target
= control target key end

     0   :  { %9 = vsyncpa [#allocation3], 0  ;;  %s554_s15 = smov [#allocation2]   ;;  %s617_s0 = inlined_call_operand.vmem [shape: bf16[16,8], index: 0, kind: input, shape index: {}]   ;;  %s618_s1 = inlined_call_operand.vmem [shape: bf16[1,1,8,256], index: 1, kind: input, shape index: {}]   ;;  %s619_s2 = inlined_call_operand.hbm [shape: bf16[1,1,256,256], index: 2, kind: input, shape index: {}]   ;;  %s620_s3 = inlined_call_operand.vmem [shape: bf16[1,1,1,256], index: 3, kind: input, shape index: {}]   ;;  %s621_s4 = inlined_call_operand.vmem [shape: f32[16,8], index: 4, kind: output, shape index: {}]  }
   0x1   :  { %s19_s16 = sshll.u32 %s554_s15, 4  ;;  %s530_s19 = scalar_lea.hbm %s619_s2, 4096  ;;  %s20_s16 = int_to_ptr.vmem [resolvable:$true] %s19_s16 }
   0x2   :  { %p531_p0 = scmp.ne.s32.totalorder %s619_s2, %s530_s19  ;;  %p534_p1 = scmp.lt.u32.totalorder %s530_s19, %s619_s2 }
   0x4   :  { %p536_p2 = pnand %p534_p1, %p531_p0 }
   0x6   :  { %539 = shalt.err (!%p536_p2)
}
   0x7   :  { %s540_s24 = scalar_lea.vmem %s20_s16, 4096  ;;  %p545_p4 = scmp.lt.s32.totalorder %s20_s16, %s20_s16 }
   0x8   :  { %p541_p3 = scmp.ne.s32.totalorder %s20_s16, %s540_s24  ;;  %p546_p5 = scmp.lt.s32.totalorder %s540_s24, %s540_s24 }
   0xa   :  { %p547_p6 = por %p546_p5, %p545_p4 }
   0xc   :  { %p548_p7 = pnand %p547_p6, %p541_p3 }
   0xe   :  { %551 = shalt.err (!%p548_p7)
}
   0xf   :  { %s555_s25 = smov 128   ;;  %s556_s26 = smov 8  }
  0x10   :  { %25 = dma.hbm_to_vmem [thread:$0]  %s619_s2, 4096, %s20_s16, [#allocation3], %s555_s25, %s555_s25, %s556_s26  }
  0x11   :  { %552 = dma.done.wait [#allocation3], 4096  }
  0x12   :  { %553 = vsyncadd [#allocation3], 4294963200  ;;  %v557_v0 = vmov 0   ;;  %v34_v1 = vld [vmem:[%s618_s1] sm:$0xff]  ;;  %vm49_vm0 = vcmask 1043456   ;;  %vm45_vm1 = vcmask 64512   ;;  %v363_v52 = vlaneseq }
  0x13   :  { %88 = vmatprep.mubr.bf16.mxu0 %v557_v0  ;;  %v436_v2 = vcombine.high %v34_v1, %v34_v1  ;;  %v435_v3 = vcombine.low %v34_v1, %v34_v1  ;;  %v482_v4 = vld [vmem:[#allocation2 + $0x4] ss:$8 sps:$4 sm:$0xff]   ;;  %v484_v5 = vld [vmem:[#allocation2] ss:$8 sps:$4 sm:$0xff]   ;;  %v481_v7 = vld [vmem:[%s617_s0] sm:$0xff]   ;;  %s558_s2 = smov 64  }
  0x14   :  { %v485_v8 = vld [vmem:[#allocation2 + $0x14] ss:$8 sps:$4 sm:$0xff]   ;;  %305 = vmatprep.subr.bf16.mxu1 %v482_v4  ;;  %v487_v9 = vld [vmem:[#allocation2 + $0x10] ss:$8 sps:$4 sm:$0xff]   ;;  %v488_v10 = vld [vmem:[#allocation2 + $0x24] ss:$8 sps:$4 sm:$0xff]  }
  0x15   :  { %437 = vmatprep.subr.msk.bf16.mxu0 %vm49_vm0, %v436_v2  ;;  %v51_v6 = vsel %vm49_vm0, %v435_v3, 0  ;;  %306 = vmatpush1.bf16.msra.mxu1 %v484_v5  ;;  %v490_v11 = vld [vmem:[#allocation2 + $0x20] ss:$8 sps:$4 sm:$0xff]   ;;  %v491_v12 = vld [vmem:[#allocation2 + $0x34] ss:$8 sps:$4 sm:$0xff]   ;;  %v364_v53 = vshrl.u32 %v363_v52, 7 }
  0x16   :  { %57 = vmatpush1.bf16.msra.mxu0 %v51_v6  ;;  %307 = vmatprep.subr.bf16.mxu1 %v485_v8  ;;  %v493_v13 = vld [vmem:[#allocation2 + $0x30] ss:$8 sps:$4 sm:$0xff]   ;;  %v494_v14 = vld [vmem:[#allocation2 + $0x44] ss:$8 sps:$4 sm:$0xff]   ;;  %v496_v15 = vld [vmem:[#allocation2 + $0x40] ss:$8 sps:$4 sm:$0xff]  }
  0x17   :  { %v497_v16 = vld [vmem:[#allocation2 + $0x54] ss:$8 sps:$4 sm:$0xff]   ;;  %v499_v17 = vld [vmem:[#allocation2 + $0x50] ss:$8 sps:$4 sm:$0xff]   ;;  %v500_v18 = vld [vmem:[#allocation2 + $0x64] ss:$8 sps:$4 sm:$0xff]  }
  0x18   :  { %v502_v19 = vld [vmem:[#allocation2 + $0x60] ss:$8 sps:$4 sm:$0xff]   ;;  %v503_v20 = vld [vmem:[#allocation2 + $0x74] ss:$8 sps:$4 sm:$0xff]   ;;  %v505_v21 = vld [vmem:[#allocation2 + $0x70] ss:$8 sps:$4 sm:$0xff]  }
  0x19   :  { %438 = vmatmul.mubr.msk.bf16.vlgmr.msra.gmra.mrb[0].mxu0 %vm45_vm1, %v481_v7  ;;  %308 = vmatpush1.bf16.msra.mxu1 %v487_v9  ;;  %v506_v22 = vld [vmem:[#allocation2 + $0x84] ss:$8 sps:$4 sm:$0xff]   ;;  %v508_v23 = vld [vmem:[#allocation2 + $0x80] ss:$8 sps:$4 sm:$0xff]   ;;  %v509_v24 = vld [vmem:[#allocation2 + $0x94] ss:$8 sps:$4 sm:$0xff]  }
  0x1a   :  { %309 = vmatprep.subr.bf16.mxu1 %v488_v10  ;;  %v511_v25 = vld [vmem:[#allocation2 + $0x90] ss:$8 sps:$4 sm:$0xff]   ;;  %v512_v26 = vld [vmem:[#allocation2 + $0xa4] ss:$8 sps:$4 sm:$0xff]   ;;  %v514_v27 = vld [vmem:[#allocation2 + $0xa0] ss:$8 sps:$4 sm:$0xff]  }
  0x1b   :  { %v515_v28 = vld [vmem:[#allocation2 + $0xb4] ss:$8 sps:$4 sm:$0xff]   ;;  %v517_v29 = vld [vmem:[#allocation2 + $0xb0] ss:$8 sps:$4 sm:$0xff]   ;;  %v518_v30 = vld [vmem:[#allocation2 + $0xc4] ss:$8 sps:$4 sm:$0xff]  }
  0x1c   :  { %v520_v31 = vld [vmem:[#allocation2 + $0xc0] ss:$8 sps:$4 sm:$0xff]   ;;  %v521_v32 = vld [vmem:[#allocation2 + $0xd4] ss:$8 sps:$4 sm:$0xff]   ;;  %v523_v33 = vld [vmem:[#allocation2 + $0xd0] ss:$8 sps:$4 sm:$0xff]  }
  0x1d   :  { %310 = vmatpush1.bf16.msra.mxu1 %v490_v11  ;;  %v524_v34 = vld [vmem:[#allocation2 + $0xe4] ss:$8 sps:$4 sm:$0xff]   ;;  %v526_v35 = vld [vmem:[#allocation2 + $0xe0] ss:$8 sps:$4 sm:$0xff]   ;;  %v527_v36 = vld [vmem:[#allocation2 + $0xf4] ss:$8 sps:$4 sm:$0xff]  }
  0x1e   :  { %311 = vmatprep.subr.bf16.mxu1 %v491_v12  ;;  %v529_v37 = vld [vmem:[#allocation2 + $0xf0] ss:$8 sps:$4 sm:$0xff]   ;;  %v365_v56 = vsub.s32 0, %v364_v53  ;;  %v369_v57 = vsub.s32 2, %v364_v53  ;;  %s560_s7 = smov 112   ;;  %s561_s8 = smov 120  }
  0x1f   :  { %v360_v54 = vld [vmem:[%s620_s3] sm:$0x3]  ;;  %s559_s3 = smov 96  }
  0x20   :  { %v361_v55 = vunpack.c.l.bf16 %v360_v54 }
  0x21   :  { %312 = vmatpush1.bf16.msra.mxu1 %v493_v13 }
  0x22   :  { %313 = vmatprep.subr.bf16.mxu1 %v494_v14  ;;  %v366_v58 = vrot.slane %v361_v55, %v365_v56  ;;  %v370_v59 = vrot.slane %v361_v55, %v369_v57 }
  0x24   :  { %v376_v61 = vrot.slane %v366_v58, %v365_v56  ;;  %v380_v0 = vrot.slane %v370_v59, %v365_v56 }
  0x25   :  { %314 = vmatpush1.bf16.msra.mxu1 %v496_v15 }
  0x26   :  { %315 = vmatprep.subr.bf16.mxu1 %v497_v16 }
  0x29   :  { %316 = vmatpush1.bf16.msra.mxu1 %v499_v17 }
  0x2a   :  { %317 = vmatprep.subr.bf16.mxu1 %v500_v18 }
  0x2d   :  { %318 = vmatpush1.bf16.msra.mxu1 %v502_v19 }
  0x2e   :  { %319 = vmatprep.subr.bf16.mxu1 %v503_v20 }
  0x31   :  { %320 = vmatpush1.bf16.msra.mxu1 %v505_v21 }
  0x32   :  { %321 = vmatprep.subr.bf16.mxu1 %v506_v22 }
  0x35   :  { %322 = vmatpush1.bf16.msra.mxu1 %v508_v23 }
  0x36   :  { %323 = vmatprep.subr.bf16.mxu1 %v509_v24 }
  0x39   :  { %324 = vmatpush1.bf16.msra.mxu1 %v511_v25 }
  0x3a   :  { %325 = vmatprep.subr.bf16.mxu1 %v512_v26 }
  0x3d   :  { %326 = vmatpush1.bf16.msra.mxu1 %v514_v27 }
  0x3e   :  { %327 = vmatprep.subr.bf16.mxu1 %v515_v28 }
  0x41   :  { %328 = vmatpush1.bf16.msra.mxu1 %v517_v29 }
  0x42   :  { %329 = vmatprep.subr.bf16.mxu1 %v518_v30 }
  0x45   :  { %330 = vmatpush1.bf16.msra.mxu1 %v520_v31 }
  0x46   :  { %331 = vmatprep.subr.bf16.mxu1 %v521_v32 }
  0x49   :  { %332 = vmatpush1.bf16.msra.mxu1 %v523_v33 }
  0x4a   :  { %333 = vmatprep.subr.bf16.mxu1 %v524_v34 }
  0x4d   :  { %334 = vmatpush1.bf16.msra.mxu1 %v526_v35 }
  0x4e   :  { %335 = vmatprep.subr.bf16.mxu1 %v527_v36 }
  0x51   :  { %336 = vmatpush1.bf16.msra.mxu1 %v529_v37 }
  0xec   :  { %v90_v38 = vpop.f32.mrb[0].mxu0 }
  0xed   :  { %v103_v39 = vmul.f32 0.01, %v90_v38  ;;  %v92_v40 = vpop.f32.mrb[1].mxu0  ;;  %vm99_vm2 = vcmp.gt.f32.partialorder %v90_v38, 0.0 }
  0xee   :  { %v104_v41 = vmul.f32 0.01, %v92_v40  ;;  %v94_v42 = vpop.f32.mrb[2].mxu0  ;;  %vm100_vm4 = vcmp.gt.f32.partialorder %v92_v40, 0.0 }
  0xef   :  { %vm101_vm3 = vcmp.gt.f32.partialorder %v94_v42, 0.0  ;;  %v105_v43 = vmul.f32 0.01, %v94_v42  ;;  %v96_v44 = vpop.f32.mrb[3].mxu0  ;;  %v107_v46 = vsel %vm99_vm2, %v90_v38, %v103_v39 }
  0xf0   :  { %vm102_vm5 = vcmp.gt.f32.partialorder %v96_v44, 0.0  ;;  %v106_v45 = vmul.f32 0.01, %v96_v44  ;;  %v108_v48 = vsel %vm100_vm4, %v92_v40, %v104_v41 }
  0xf1   :  { %v109_v47 = vsel %vm101_vm3, %v94_v42, %v105_v43 }
  0xf2   :  { %v110_v49 = vsel %vm102_vm5, %v96_v44, %v106_v45  ;;  %v111_v50 = vpack.c.bf16 %v109_v47, %v107_v46 }
  0xf3   :  { %v112_v51 = vpack.c.bf16 %v110_v49, %v108_v48 }
  0xf5   :  { %337 = vmatprep.mubr.bf16.mxu1 %v112_v51 }
  0xf6   :  { %338 = vmatmul.mubr.bf16.vlgmr.msra.gmra.mrb[0].mxu1 %v111_v50 }
 0x1c9   :  { %v339_v60 = vpop.f32.mrb[0].mxu1 }
 0x1ca   :  { %vm348_vm6 = vcmp.gt.f32.partialorder %v339_v60, 0.0  ;;  %v352_v62 = vmul.f32 0.01, %v339_v60  ;;  %v341_v63 = vpop.f32.mrb[1].mxu1 }
 0x1cb   :  { %vm349_vm7 = vcmp.gt.f32.partialorder %v341_v63, 0.0  ;;  %v353_v1 = vmul.f32 0.01, %v341_v63  ;;  %v343_v2 = vpop.f32.mrb[2].mxu1 }
 0x1cc   :  { %v356_v3 = vsel %vm348_vm6, %v339_v60, %v352_v62  ;;  %vm350_vm8 = vcmp.gt.f32.partialorder %v343_v2, 0.0  ;;  %v354_v4 = vmul.f32 0.01, %v343_v2  ;;  %v345_v5 = vpop.f32.mrb[3].mxu1 }
 0x1cd   :  { %v357_v6 = vsel %vm349_vm7, %v341_v63, %v353_v1  ;;  %vm351_vm9 = vcmp.gt.f32.partialorder %v345_v5, 0.0  ;;  %v355_v7 = vmul.f32 0.01, %v345_v5  ;;  %v381_v8 = vmul.f32 %v376_v61, %v356_v3 }
 0x1ce   :  { %v358_v9 = vsel %vm350_vm8, %v343_v2, %v354_v4  ;;  %v382_v10 = vmul.f32 %v380_v0, %v357_v6 }
 0x1cf   :  { %v383_v11 = vmul.f32 %v376_v61, %v358_v9  ;;  %v359_v12 = vsel %vm351_vm9, %v345_v5, %v355_v7 }
 0x1d0   :  { %v384_v13 = vmul.f32 %v380_v0, %v359_v12  ;;  %v385_v14 = vadd.f32 %v382_v10, %v381_v8 }
 0x1d2   :  { %389 = vrot.lane.b32.xlu0 %v385_v14, %s558_s2  ;;  %v386_v15 = vadd.f32 %v384_v13, %v383_v11 }
 0x1d6   :  { %391 = vrot.lane.b32.xlu0 %v386_v15, %s558_s2 }
 0x244   :  { %v390_v16 = vpop.permute.xlu0 %389 }
 0x245   :  { %v395_v17 = vadd.f32 %v390_v16, %v385_v14 }
 0x247   :  { %399 = vrot.lane.b32.xlu1 %v395_v17, %s559_s3 }
 0x248   :  { %v392_v18 = vpop.permute.xlu0 %391 }
 0x249   :  { %v396_v19 = vadd.f32 %v392_v18, %v386_v15 }
 0x24b   :  { %401 = vrot.lane.b32.xlu1 %v396_v19, %s559_s3 }
 0x2b9   :  { %v400_v20 = vpop.permute.xlu1 %399 }
 0x2ba   :  { %v405_v21 = vadd.f32 %v400_v20, %v395_v17 }
 0x2bc   :  { %409 = vrot.lane.b32.xlu0 %v405_v21, %s560_s7 }
 0x2bd   :  { %v402_v22 = vpop.permute.xlu1 %401 }
 0x2be   :  { %v406_v23 = vadd.f32 %v402_v22, %v396_v19 }
 0x2c0   :  { %411 = vrot.lane.b32.xlu1 %v406_v23, %s560_s7 }
 0x32e   :  { %v410_v24 = vpop.permute.xlu0 %409 }
 0x32f   :  { %v415_v25 = vadd.f32 %v410_v24, %v405_v21 }
 0x331   :  { %419 = vrot.lane.b32.xlu0 %v415_v25, %s561_s8 }
 0x332   :  { %v412_v26 = vpop.permute.xlu1 %411 }
 0x333   :  { %v416_v27 = vadd.f32 %v412_v26, %v406_v23 }
 0x335   :  { %421 = vrot.lane.b32.xlu1 %v416_v27, %s561_s8 }
 0x3a3   :  { %v420_v28 = vpop.permute.xlu0 %419 }
 0x3a4   :  { %v425_v29 = vadd.f32 %v420_v28, %v415_v25 }
 0x3a6   :  { %427 = vst.msk [vmem:[%s621_s4] sm:$0xff] %vm45_vm1, %v425_v29 }
 0x3a7   :  { %v422_v30 = vpop.permute.xlu1 %421 }
 0x3a8   :  { %v426_v31 = vadd.f32 %v422_v30, %v416_v27 }
 0x3aa   :  { %428 = vst.msk [vmem:[%s621_s4 + $0x8] sm:$0xff] %vm45_vm1, %v426_v31 }
 0x3ab   :  { %433 = vsyncpa [#allocation3], 1 }

</bundles_post_ra>
